<compile_context>
chip_gen: v6e
topology: v6e:2x2x1
jax: 0.10.0
libtpu: 0.0.40
codegen_flags: <defaults>
</compile_context>

<pallas_src>
import functools

import jax
import jax.numpy as jnp
from jax.experimental import pallas as pl
from jax.experimental.pallas import tpu as pltpu

_LANES = 128
_SUBLANES = 8


def _fold_rows(a):
    """(tile_rows, 128) -> (8, 128) partial sum using only vreg-wise VPU adds."""
    acc = a[0:_SUBLANES, :]
    for r in range(_SUBLANES, a.shape[0], _SUBLANES):
        acc = acc + a[r:r + _SUBLANES, :]
    return acc


def _vloss_kernel(x_ref, t_ref, mu_ref, lv_ref, o_ref,
                  acc_t, acc_f, acc_tf, *, total_elems, w):
    i = pl.program_id(0)

    @pl.when(i == 0)
    def _init():
        acc_t[...] = jnp.zeros_like(acc_t)
        acc_f[...] = jnp.zeros_like(acc_f)
        acc_tf[...] = jnp.zeros_like(acc_tf)

    # Upcast once per tile (inputs stay bf16 / int / f32 in HBM).
    x = x_ref[...].astype(jnp.float32)
    t = t_ref[...].astype(jnp.float32)

    # Numerically stable BCE-with-logits core term.
    f = jnp.maximum(x, 0.0) - x * t + jnp.log1p(jnp.exp(-jnp.abs(x)))

    # Lane-resident partial sums: no cross-lane work in the hot loop.
    acc_t[...] += _fold_rows(t)
    acc_f[...] += _fold_rows(f)
    acc_tf[...] += _fold_rows(t * f)

    @pl.when(i == pl.num_programs(0) - 1)
    def _finalize():
        sum_t = jnp.sum(acc_t[...])
        sum_f = jnp.sum(acc_f[...])
        sum_tf = jnp.sum(acc_tf[...])

        s = jnp.float32(total_elems)
        # PyTorch: p = int(target.sum()) -> truncation toward zero.
        p = jnp.trunc(sum_t)
        # NOTE: p == s (all-ones target) yields inf/nan, matching the PyTorch module.
        neg_w = s / (s - p)
        safe_p = jnp.where(p == 0, jnp.float32(1.0), p)
        a_coef = jnp.where(p != 0, s / safe_p - neg_w, jnp.float32(1.0))
        b_coef = jnp.where(p != 0, neg_w, jnp.float32(1.0))
        bce = a_coef * sum_tf + b_coef * sum_f

        mu = mu_ref[...].astype(jnp.float32)
        lv = lv_ref[...].astype(jnp.float32)
        kld = -0.5 * jnp.sum(1.0 + lv - mu * mu - jnp.exp(lv))

        o_ref[0, 0] = bce + jnp.float32(w) * kld


def _to_slab(a, padded_elems, pad_value):
    """Flatten to a lane-dense (rows, 128) slab, padding the tail with pad_value."""
    flat = a.reshape(-1)
    n = flat.shape[0]
    if padded_elems != n:
        flat = jnp.pad(flat, (0, padded_elems - n), constant_values=pad_value)
    return flat.reshape(padded_elems // _LANES, _LANES)


def vloss(input_logits, target, mu, logvar, *, w=0.0, max_tile_rows=1024):
    """Pallas implementation of VLoss.forward(input, target, mu, logvar)."""
    total_elems = int(input_logits.size)
    assert int(target.size) == total_elems

    rows = -(-total_elems // _LANES)
    tile_rows = min(int(max_tile_rows),
                    ((rows + _SUBLANES - 1) // _SUBLANES) * _SUBLANES)
    tile_rows = max(tile_rows, _SUBLANES)
    assert tile_rows % _SUBLANES == 0
    num_tiles = -(-rows // tile_rows)
    padded_elems = num_tiles * tile_rows * _LANES

    # Pad x with a large-but-finite negative logit and t with 0: padded elements then
    # contribute exactly 0 to sum_t, sum_f and sum_tf (softplus(-1e4) underflows to 0).
    x2d = _to_slab(input_logits, padded_elems, -1e4)
    t2d = _to_slab(target, padded_elems, 0)

    mu2d = mu.reshape(mu.shape[0], -1)
    lv2d = logvar.reshape(logvar.shape[0], -1)

    kernel = functools.partial(_vloss_kernel, total_elems=total_elems, w=float(w))

    out = pl.pallas_call(
        kernel,
        grid=(num_tiles,),
        in_specs=[
            pl.BlockSpec((tile_rows, _LANES), lambda i: (i, 0)),
            pl.BlockSpec((tile_rows, _LANES), lambda i: (i, 0)),
            pl.BlockSpec(mu2d.shape, lambda i: (0, 0)),
            pl.BlockSpec(lv2d.shape, lambda i: (0, 0)),
        ],
        out_specs=pl.BlockSpec(memory_space=pltpu.SMEM),
        out_shape=jax.ShapeDtypeStruct((1, 1), jnp.float32),
        scratch_shapes=[pltpu.VMEM((_SUBLANES, _LANES), jnp.float32)] * 3,
        compiler_params=pltpu.CompilerParams(
            dimension_semantics=("arbitrary",),
            vmem_limit_bytes=32 * 1024 * 1024,
        ),
    )(x2d, t2d, mu2d, lv2d)
    return out[0, 0]


def _vloss_ref(input_logits, target, mu, logvar, *, w=0.0):
    """Pure-JAX reference mirroring the PyTorch semantics."""
    x = input_logits.astype(jnp.float32)
    t = target.astype(jnp.float32)
    s = float(x.size)
    p = jnp.trunc(jnp.sum(t))
    neg_w = s / (s - p)
    safe_p = jnp.where(p == 0, 1.0, p)
    weight = jnp.where(p != 0, t * (s / safe_p - neg_w) + neg_w, t + 1.0)
    bce = jnp.sum(weight * (jnp.maximum(x, 0.0) - x * t
                            + jnp.log1p(jnp.exp(-jnp.abs(x)))))
    kld = -0.5 * jnp.sum(1.0 + logvar.astype(jnp.float32)
                         - mu.astype(jnp.float32) ** 2
                         - jnp.exp(logvar.astype(jnp.float32)))
    return bce + w * kld


if __name__ == "__main__":
    key = jax.random.PRNGKey(0)
    k1, k2, k3, k4 = jax.random.split(key, 4)

    B, C, H, W = 2, 4, 16, 16   # logits / targets (NCHW, as produced by the decoder)
    Z = 32                      # latent size for mu / logvar
    w = 0.5                     # VLoss(w=0.5); VLoss default is w=0

    input_logits = jax.random.normal(k1, (B, C, H, W), dtype=jnp.float32)
    target = (jax.random.uniform(k2, (B, C, H, W)) > 0.7).astype(jnp.float32)
    mu = jax.random.normal(k3, (B, Z), dtype=jnp.float32)
    logvar = 0.1 * jax.random.normal(k4, (B, Z), dtype=jnp.float32)

    out = vloss(input_logits, target, mu, logvar, w=w)
    out = jax.block_until_ready(out)
    ref = _vloss_ref(input_logits, target, mu, logvar, w=w)
    assert jnp.allclose(out, ref, rtol=1e-5, atol=1e-3), (out, ref)

    # Exercise the multi-tile streamed path + padding (size not a multiple of 128)
    # + native bf16 HBM traffic.
    x_odd = jax.random.normal(k1, (2, 3, 17, 19), dtype=jnp.bfloat16)
    t_odd = (jax.random.uniform(k2, (2, 3, 17, 19)) > 0.5).astype(jnp.bfloat16)
    out2 = vloss(x_odd, t_odd, mu, logvar, w=w, max_tile_rows=8)
    out2 = jax.block_until_ready(out2)
    ref2 = _vloss_ref(x_odd, t_odd, mu, logvar, w=w)
    assert jnp.allclose(out2, ref2, rtol=1e-4, atol=1e-2), (out2, ref2)

    print("KERNEL_OK")
</pallas_src>

<mosaic_0001>
module attributes {stable_mosaic.version = 11 : i64} {
  func.func @_vloss_kernel(%arg0: i32, %arg1: memref<16x128xf32, #tpu.memory_space<vmem>>, %arg2: memref<16x128xf32, #tpu.memory_space<vmem>>, %arg3: memref<2x32xf32, #tpu.memory_space<vmem>>, %arg4: memref<2x32xf32, #tpu.memory_space<vmem>>, %arg5: memref<1x1xf32, #tpu.memory_space<smem>>, %arg6: memref<8x128xf32, #tpu.memory_space<vmem>>, %arg7: memref<8x128xf32, #tpu.memory_space<vmem>>, %arg8: memref<8x128xf32, #tpu.memory_space<vmem>>) attributes {dimension_semantics = [#tpu.dimension_semantics<arbitrary>], iteration_bounds = array<i64: 1>, scalar_prefetch = 0 : i64, scratch_operands = 3 : i64, tpu.core_type = #tpu.core_type<tc>, window_params = [{transform_indices = @transform_0, window_bounds = array<i64: 16, 128>}, {transform_indices = @transform_1, window_bounds = array<i64: 16, 128>}, {pipeline_mode = #tpu.pipeline_mode<synchronous>, transform_indices = @transform_2, window_bounds = array<i64: 2, 32>}, {pipeline_mode = #tpu.pipeline_mode<synchronous>, transform_indices = @transform_3, window_bounds = array<i64: 2, 32>}, {transform_indices = @transform_4, window_bounds = array<i64: 1, 1>}]} {
    %c0_i32 = arith.constant 0 : i32
    %0 = arith.cmpi eq, %arg0, %c0_i32 : i32
    %1 = arith.extui %0 : i1 to i32
    %c0_i32_0 = arith.constant 0 : i32
    %2 = arith.cmpi ne, %1, %c0_i32_0 : i32
    scf.if %2 {
      %cst_19 = arith.constant 0.000000e+00 : f32
      %37 = vector.broadcast %cst_19 : f32 to vector<8x128xf32>
      %c0_20 = arith.constant 0 : index
      %c0_21 = arith.constant 0 : index
      %38 = vector.load %arg6[%c0_20, %c0_21] : memref<8x128xf32, #tpu.memory_space<vmem>>, vector<8x128xf32>
      tpu.vector_store %arg6[%c0_20, %c0_21], %37 {strides = array<i32>} : memref<8x128xf32, #tpu.memory_space<vmem>>, vector<8x128xf32>,
      %cst_22 = arith.constant 0.000000e+00 : f32
      %39 = vector.broadcast %cst_22 : f32 to vector<8x128xf32>
      %c0_23 = arith.constant 0 : index
      %c0_24 = arith.constant 0 : index
      %40 = vector.load %arg7[%c0_23, %c0_24] : memref<8x128xf32, #tpu.memory_space<vmem>>, vector<8x128xf32>
      tpu.vector_store %arg7[%c0_23, %c0_24], %39 {strides = array<i32>} : memref<8x128xf32, #tpu.memory_space<vmem>>, vector<8x128xf32>,
      %cst_25 = arith.constant 0.000000e+00 : f32
      %41 = vector.broadcast %cst_25 : f32 to vector<8x128xf32>
      %c0_26 = arith.constant 0 : index
      %c0_27 = arith.constant 0 : index
      %42 = vector.load %arg8[%c0_26, %c0_27] : memref<8x128xf32, #tpu.memory_space<vmem>>, vector<8x128xf32>
      tpu.vector_store %arg8[%c0_26, %c0_27], %41 {strides = array<i32>} : memref<8x128xf32, #tpu.memory_space<vmem>>, vector<8x128xf32>,
    } else {
    }
    %c0 = arith.constant 0 : index
    %c0_1 = arith.constant 0 : index
    %3 = vector.load %arg1[%c0, %c0_1] : memref<16x128xf32, #tpu.memory_space<vmem>>, vector<16x128xf32>
    %c0_2 = arith.constant 0 : index
    %c0_3 = arith.constant 0 : index
    %4 = vector.load %arg2[%c0_2, %c0_3] : memref<16x128xf32, #tpu.memory_space<vmem>>, vector<16x128xf32>
    %cst = arith.constant 0.000000e+00 : f32
    %5 = vector.broadcast %cst : f32 to vector<16x128xf32>
    %6 = arith.maximumf %3, %5 : vector<16x128xf32>
    %7 = arith.mulf %3, %4 : vector<16x128xf32>
    %8 = arith.subf %6, %7 : vector<16x128xf32>
    %9 = math.absf %3 : vector<16x128xf32>
    %cst_4 = arith.constant 0.000000e+00 : f32
    %10 = vector.broadcast %cst_4 : f32 to vector<16x128xf32>
    %11 = arith.subf %10, %9 : vector<16x128xf32>
    %12 = math.exp %11 : vector<16x128xf32>
    %13 = math.log1p %12 : vector<16x128xf32>
    %14 = arith.addf %8, %13 : vector<16x128xf32>
    %c0_5 = arith.constant 0 : index
    %c0_6 = arith.constant 0 : index
    %15 = vector.load %arg6[%c0_5, %c0_6] : memref<8x128xf32, #tpu.memory_space<vmem>>, vector<8x128xf32>
    %16 = vector.extract_strided_slice %4 {offsets = [0, 0], sizes = [8, 128], strides = [1, 1]} : vector<16x128xf32> to vector<8x128xf32>
    %17 = vector.extract_strided_slice %4 {offsets = [8, 0], sizes = [8, 128], strides = [1, 1]} : vector<16x128xf32> to vector<8x128xf32>
    %18 = arith.addf %16, %17 : vector<8x128xf32>
    %19 = arith.addf %15, %18 : vector<8x128xf32>
    %c0_7 = arith.constant 0 : index
    %c0_8 = arith.constant 0 : index
    %20 = vector.load %arg6[%c0_7, %c0_8] : memref<8x128xf32, #tpu.memory_space<vmem>>, vector<8x128xf32>
    tpu.vector_store %arg6[%c0_7, %c0_8], %19 {strides = array<i32>} : memref<8x128xf32, #tpu.memory_space<vmem>>, vector<8x128xf32>,
    %c0_9 = arith.constant 0 : index
    %c0_10 = arith.constant 0 : index
    %21 = vector.load %arg7[%c0_9, %c0_10] : memref<8x128xf32, #tpu.memory_space<vmem>>, vector<8x128xf32>
    %22 = vector.extract_strided_slice %14 {offsets = [0, 0], sizes = [8, 128], strides = [1, 1]} : vector<16x128xf32> to vector<8x128xf32>
    %23 = vector.extract_strided_slice %14 {offsets = [8, 0], sizes = [8, 128], strides = [1, 1]} : vector<16x128xf32> to vector<8x128xf32>
    %24 = arith.addf %22, %23 : vector<8x128xf32>
    %25 = arith.addf %21, %24 : vector<8x128xf32>
    %c0_11 = arith.constant 0 : index
    %c0_12 = arith.constant 0 : index
    %26 = vector.load %arg7[%c0_11, %c0_12] : memref<8x128xf32, #tpu.memory_space<vmem>>, vector<8x128xf32>
    tpu.vector_store %arg7[%c0_11, %c0_12], %25 {strides = array<i32>} : memref<8x128xf32, #tpu.memory_space<vmem>>, vector<8x128xf32>,
    %c0_13 = arith.constant 0 : index
    %c0_14 = arith.constant 0 : index
    %27 = vector.load %arg8[%c0_13, %c0_14] : memref<8x128xf32, #tpu.memory_space<vmem>>, vector<8x128xf32>
    %28 = arith.mulf %4, %14 : vector<16x128xf32>
    %29 = vector.extract_strided_slice %28 {offsets = [0, 0], sizes = [8, 128], strides = [1, 1]} : vector<16x128xf32> to vector<8x128xf32>
    %30 = vector.extract_strided_slice %28 {offsets = [8, 0], sizes = [8, 128], strides = [1, 1]} : vector<16x128xf32> to vector<8x128xf32>
    %31 = arith.addf %29, %30 : vector<8x128xf32>
    %32 = arith.addf %27, %31 : vector<8x128xf32>
    %c0_15 = arith.constant 0 : index
    %c0_16 = arith.constant 0 : index
    %33 = vector.load %arg8[%c0_15, %c0_16] : memref<8x128xf32, #tpu.memory_space<vmem>>, vector<8x128xf32>
    tpu.vector_store %arg8[%c0_15, %c0_16], %32 {strides = array<i32>} : memref<8x128xf32, #tpu.memory_space<vmem>>, vector<8x128xf32>,
    %c0_i32_17 = arith.constant 0 : i32
    %34 = arith.cmpi eq, %arg0, %c0_i32_17 : i32
    %35 = arith.extui %34 : i1 to i32
    %c0_i32_18 = arith.constant 0 : i32
    %36 = arith.cmpi ne, %35, %c0_i32_18 : i32
    scf.if %36 {
      %c0_19 = arith.constant 0 : index
      %c0_20 = arith.constant 0 : index
      %37 = vector.load %arg6[%c0_19, %c0_20] : memref<8x128xf32, #tpu.memory_space<vmem>>, vector<8x128xf32>
      %38 = vector.shape_cast %37 : vector<8x128xf32> to vector<1x8x128xf32>
      %cst_21 = arith.constant dense<0.000000e+00> : vector<1xf32>
      %39 = vector.multi_reduction <add>, %38, %cst_21 [1, 2] : vector<1x8x128xf32> to vector<1xf32>
      %40 = vector.shape_cast %39 : vector<1xf32> to vector<1x1x1xf32>
      %41 = vector.extract %40[0, 0, 0] : f32 from vector<1x1x1xf32>
      %c0_22 = arith.constant 0 : index
      %c0_23 = arith.constant 0 : index
      %42 = vector.load %arg7[%c0_22, %c0_23] : memref<8x128xf32, #tpu.memory_space<vmem>>, vector<8x128xf32>
      %43 = vector.shape_cast %42 : vector<8x128xf32> to vector<1x8x128xf32>
      %cst_24 = arith.constant dense<0.000000e+00> : vector<1xf32>
      %44 = vector.multi_reduction <add>, %43, %cst_24 [1, 2] : vector<1x8x128xf32> to vector<1xf32>
      %45 = vector.shape_cast %44 : vector<1xf32> to vector<1x1x1xf32>
      %46 = vector.extract %45[0, 0, 0] : f32 from vector<1x1x1xf32>
      %c0_25 = arith.constant 0 : index
      %c0_26 = arith.constant 0 : index
      %47 = vector.load %arg8[%c0_25, %c0_26] : memref<8x128xf32, #tpu.memory_space<vmem>>, vector<8x128xf32>
      %48 = vector.shape_cast %47 : vector<8x128xf32> to vector<1x8x128xf32>
      %cst_27 = arith.constant dense<0.000000e+00> : vector<1xf32>
      %49 = vector.multi_reduction <add>, %48, %cst_27 [1, 2] : vector<1x8x128xf32> to vector<1xf32>
      %50 = vector.shape_cast %49 : vector<1xf32> to vector<1x1x1xf32>
      %51 = vector.extract %50[0, 0, 0] : f32 from vector<1x1x1xf32>
      %cst_28 = arith.constant 0.000000e+00 : f32
      %52 = arith.cmpf olt, %41, %cst_28 : f32
      %53 = math.ceil %41 : f32
      %54 = math.floor %41 : f32
      %55 = arith.select %52, %53, %54 : f32
      %cst_29 = arith.constant 2.048000e+03 : f32
      %56 = arith.subf %cst_29, %55 : f32
      %cst_30 = arith.constant 2.048000e+03 : f32
      %57 = arith.divf %cst_30, %56 : f32
      %cst_31 = arith.constant 0.000000e+00 : f32
      %58 = arith.cmpf oeq, %55, %cst_31 : f32
      %cst_32 = arith.constant 1.000000e+00 : f32
      %59 = arith.select %58, %cst_32, %55 : f32
      %cst_33 = arith.constant 0.000000e+00 : f32
      %60 = arith.cmpf one, %55, %cst_33 : f32
      %cst_34 = arith.constant 2.048000e+03 : f32
      %61 = arith.divf %cst_34, %59 : f32
      %62 = arith.subf %61, %57 : f32
      %cst_35 = arith.constant 1.000000e+00 : f32
      %63 = arith.select %60, %62, %cst_35 : f32
      %cst_36 = arith.constant 0.000000e+00 : f32
      %64 = arith.cmpf one, %55, %cst_36 : f32
      %cst_37 = arith.constant 1.000000e+00 : f32
      %65 = arith.select %64, %57, %cst_37 : f32
      %66 = arith.mulf %63, %51 : f32
      %67 = arith.mulf %65, %46 : f32
      %68 = arith.addf %66, %67 : f32
      %c0_38 = arith.constant 0 : index
      %c0_39 = arith.constant 0 : index
      %69 = vector.load %arg3[%c0_38, %c0_39] : memref<2x32xf32, #tpu.memory_space<vmem>>, vector<2x32xf32>
      %c0_40 = arith.constant 0 : index
      %c0_41 = arith.constant 0 : index
      %70 = vector.load %arg4[%c0_40, %c0_41] : memref<2x32xf32, #tpu.memory_space<vmem>>, vector<2x32xf32>
      %cst_42 = arith.constant 1.000000e+00 : f32
      %71 = vector.broadcast %cst_42 : f32 to vector<2x32xf32>
      %72 = arith.addf %71, %70 : vector<2x32xf32>
      %73 = arith.mulf %69, %69 : vector<2x32xf32>
      %74 = arith.subf %72, %73 : vector<2x32xf32>
      %75 = math.exp %70 : vector<2x32xf32>
      %76 = arith.subf %74, %75 : vector<2x32xf32>
      %77 = vector.shape_cast %76 : vector<2x32xf32> to vector<1x2x32xf32>
      %cst_43 = arith.constant dense<0.000000e+00> : vector<1xf32>
      %78 = vector.multi_reduction <add>, %77, %cst_43 [1, 2] : vector<1x2x32xf32> to vector<1xf32>
      %79 = vector.shape_cast %78 : vector<1xf32> to vector<1x1x1xf32>
      %80 = vector.extract %79[0, 0, 0] : f32 from vector<1x1x1xf32>
      %cst_44 = arith.constant -5.000000e-01 : f32
      %81 = arith.mulf %cst_44, %80 : f32
      %cst_45 = arith.constant 5.000000e-01 : f32
      %82 = arith.mulf %cst_45, %81 : f32
      %83 = arith.addf %68, %82 : f32
      %c0_46 = arith.constant 0 : index
      %c0_47 = arith.constant 0 : index
      %84 = memref.load %arg5[%c0_46, %c0_47] : memref<1x1xf32, #tpu.memory_space<smem>>
      memref.store %83, %arg5[%c0_46, %c0_47] : memref<1x1xf32, #tpu.memory_space<smem>>
    } else {
    }
    return
  }
  func.func @transform_0(%arg0: i32) -> (i32, i32) {
    %c0_i32 = arith.constant 0 : i32
    %c0_i32_0 = arith.constant 0 : i32
    return %arg0, %c0_i32 : i32, i32
  }
  func.func @transform_1(%arg0: i32) -> (i32, i32) {
    %c0_i32 = arith.constant 0 : i32
    %c0_i32_0 = arith.constant 0 : i32
    return %arg0, %c0_i32 : i32, i32
  }
  func.func @transform_2(%arg0: i32) -> (i32, i32) {
    %c0_i32 = arith.constant 0 : i32
    %c0_i32_0 = arith.constant 0 : i32
    %c0_i32_1 = arith.constant 0 : i32
    return %c0_i32, %c0_i32_0 : i32, i32
  }
  func.func @transform_3(%arg0: i32) -> (i32, i32) {
    %c0_i32 = arith.constant 0 : i32
    %c0_i32_0 = arith.constant 0 : i32
    %c0_i32_1 = arith.constant 0 : i32
    return %c0_i32, %c0_i32_0 : i32, i32
  }
  func.func @transform_4(%arg0: i32) -> (i32, i32) {
    %c0_i32 = arith.constant 0 : i32
    %c0_i32_0 = arith.constant 0 : i32
    %c0_i32_1 = arith.constant 0 : i32
    return %c0_i32, %c0_i32_0 : i32, i32
  }
}

</mosaic_0001>

<bundles_post_ra>
// kernel: tpu_custom_call.1
= control target key start
LH: loop header
LB: loop body
LE: loop exit
PB: predicated region body
PF: predicated region fallthrough
CT: control target
= control target key end

     0   :  { %9 = vsyncpa [#allocation6], 0  ;;  %s335_s0 = inlined_call_operand.hbm [shape: f32[16,128], index: 0, kind: input, shape index: {}]   ;;  %s336_s1 = inlined_call_operand.hbm [shape: f32[16,128], index: 1, kind: input, shape index: {}]   ;;  %s337_s2 = inlined_call_operand.vmem [shape: f32[2,32], index: 2, kind: input, shape index: {}]   ;;  %s338_s3 = inlined_call_operand.vmem [shape: f32[2,32], index: 3, kind: input, shape index: {}]   ;;  %s339_s4 = inlined_call_operand.hbm [shape: f32[1,1], index: 4, kind: output, shape index: {}]  }
   0x1   :  { %10 = vsyncpa [#allocation9], 0 }
   0x2   :  { %11 = vsyncpa [#allocation7], 0  ;;  %s284_s15 = smov [#allocation5]  }
   0x3   :  { %s17_s16 = sshll.u32 %s284_s15, 4  ;;  %s18_s16 = int_to_ptr.vmem [resolvable:$true] %s17_s16 }
   0x4   :  { %s238_s17 = scalar_lea.vmem %s18_s16, 256  ;;  %p243_p1 = scmp.lt.s32.totalorder %s18_s16, %s18_s16 }
   0x5   :  { %p239_p0 = scmp.ne.s32.totalorder %s18_s16, %s238_s17  ;;  %p244_p2 = scmp.lt.s32.totalorder %s238_s17, %s238_s17 }
   0x7   :  { %p245_p3 = por %p244_p2, %p243_p1 }
   0x9   :  { %p246_p4 = pnand %p245_p3, %p239_p0 }
   0xb   :  { %249 = shalt.err (!%p246_p4)
}
   0xc   :  { %s285_s18 = smov 128   ;;  %s286_s19 = smov 8  }
   0xd   :  { %23 = dma.hbm_to_vmem [thread:$0]  %s335_s0, 256, %s18_s16, [#allocation6], %s285_s18, %s285_s18, %s286_s19  }
   0xe   :  { %s287_s22 = smov [#allocation8]  }
   0xf   :  { %s29_s23 = sshll.u32 %s287_s22, 4  ;;  %s30_s23 = int_to_ptr.vmem [resolvable:$true] %s29_s23 }
  0x10   :  { %s258_s24 = scalar_lea.vmem %s30_s23, 256  ;;  %p263_p6 = scmp.lt.s32.totalorder %s30_s23, %s30_s23 }
  0x11   :  { %p259_p5 = scmp.ne.s32.totalorder %s30_s23, %s258_s24  ;;  %p264_p7 = scmp.lt.s32.totalorder %s258_s24, %s258_s24 }
  0x13   :  { %p265_p8 = por %p264_p7, %p263_p6 }
  0x15   :  { %p266_p9 = pnand %p265_p8, %p259_p5 }
  0x17   :  { %269 = shalt.err (!%p266_p9)
}
  0x18   :  { %35 = dma.hbm_to_vmem [thread:$0]  %s336_s1, 256, %s30_s23, [#allocation9], %s285_s18, %s285_s18, %s286_s19  }
  0x19   :  { %278 = dma.done.wait [#allocation6], 256  }
  0x1a   :  { %279 = vsyncadd [#allocation6], 4294967040 }
  0x1b   :  { %280 = dma.done.wait [#allocation9], 256  }
  0x1c   :  { %281 = vsyncadd [#allocation9], 4294967040  ;;  %v55_v0 = vld [vmem:[#allocation8] sm:$0xff]  ;;  %v56_v1 = vld [vmem:[#allocation8 + $0x8] sm:$0xff]  ;;  %vm168_vm2 = vcmask 254976   ;;  %s288_s21 = smov [#allocation10]  }
  0x1d   :  { %v53_v2 = vld [vmem:[#allocation5] sm:$0xff]  ;;  %v92_v3 = vadd.f32 %v56_v1, %v55_v0  ;;  %v54_v4 = vld [vmem:[#allocation5 + $0x8] sm:$0xff] }
  0x1e   :  { %v63_v5 = vand.u32 2147483647, %v53_v2  ;;  %v64_v6 = vand.u32 2147483647, %v54_v4  ;;  %v161_v14 = vld [vmem:[%s338_s3] sm:$0x3]  ;;  %v59_v20 = vmul.f32 %v55_v0, %v53_v2  ;;  %v60_v25 = vmul.f32 %v56_v1, %v54_v4 }
  0x1f   :  { %109 = vadd.xlane.f32.xlu0 %v92_v3  ;;  %v165_v16 = vmul.f32 1.442695, %v161_v14  ;;  %v57_v21 = vmax.f32 %v53_v2, 0.0  ;;  %v160_v24 = vld [vmem:[%s337_s2] sm:$0x3]  ;;  %v58_v26 = vmax.f32 %v54_v4, 0.0 }
  0x20   :  { %v65_v7 = vsub.f32 0.0, %v63_v5  ;;  %v66_v8 = vsub.f32 0.0, %v64_v6  ;;  %v163_v29 = vmul.f32 %v160_v24, %v160_v24  ;;  %v162_v33 = vadd.f32 1.0, %v161_v14 }
  0x21   :  { %v61_v31 = vsub.f32 %v57_v21, %v59_v20  ;;  %v62_v35 = vsub.f32 %v58_v26, %v60_v25 }
  0x22   :  { %v67_v9 = vmul.f32 1.442695, %v65_v7  ;;  %v69_v10 = vmul.f32 1.442695, %v66_v8  ;;  %v164_v41 = vsub.f32 %v162_v33, %v163_v29 }
  0x24   :  { %216 = vpow2.f32 %v67_v9 }
  0x25   :  { %218 = vpow2.f32 %v69_v10 }
  0x31   :  { %v217_v11 = vpop.eup %216 }
  0x32   :  { %v219_v12 = vpop.eup %218  ;;  %v71_v13 = vadd.f32 1.0, %v217_v11  ;;  %v74_v17 = vmul.f32 -0.5, %v217_v11  ;;  %v77_v22 = vand.u32 2147483647, %v217_v11 }
  0x33   :  { %v80_v15 = vadd.f32 1.0, %v219_v12  ;;  %v83_v18 = vmul.f32 -0.5, %v219_v12  ;;  %v86_v27 = vand.u32 2147483647, %v219_v12 }
  0x34   :  { %220 = vlog2.f32 %v71_v13  ;;  %v75_v19 = vadd.f32 1.0, %v74_v17  ;;  %vm78_vm0 = vcmp.lt.f32.partialorder %v77_v22, 0.0004427343 }
  0x35   :  { %222 = vlog2.f32 %v80_v15  ;;  %v84_v23 = vadd.f32 1.0, %v83_v18  ;;  %vm87_vm1 = vcmp.lt.f32.partialorder %v86_v27, 0.0004427343 }
  0x36   :  { %224 = vpow2.f32 %v165_v16  ;;  %v76_v28 = vmul.f32 %v217_v11, %v75_v19 }
  0x37   :  { %v85_v32 = vmul.f32 %v219_v12, %v84_v23 }
  0x41   :  { %v221_v30 = vpop.eup %220 }
  0x42   :  { %v223_v34 = vpop.eup %222  ;;  %v73_v36 = vmul.f32 0.6931472, %v221_v30 }
  0x43   :  { %v82_v37 = vmul.f32 0.6931472, %v223_v34  ;;  %v225_v42 = vpop.eup %224 }
  0x44   :  { %v79_v38 = vsel %vm78_vm0, %v76_v28, %v73_v36  ;;  %v167_v47 = vsub.f32 %v164_v41, %v225_v42 }
  0x45   :  { %v88_v39 = vsel %vm87_vm1, %v85_v32, %v82_v37  ;;  %v89_v40 = vadd.f32 %v79_v38, %v61_v31 }
  0x46   :  { %v90_v43 = vadd.f32 %v88_v39, %v62_v35  ;;  %v169_v49 = vsel %vm168_vm2, %v167_v47, 0.0 }
  0x47   :  { %v100_v44 = vmul.f32 %v89_v40, %v55_v0 }
  0x48   :  { %v101_v45 = vmul.f32 %v90_v43, %v56_v1  ;;  %v96_v46 = vadd.f32 %v90_v43, %v89_v40 }
  0x4a   :  { %v102_v48 = vadd.f32 %v101_v45, %v100_v44  ;;  %119 = vadd.xlane.f32.xlu0 %v96_v46 }
  0x4c   :  { %129 = vadd.xlane.f32.xlu1 %v102_v48 }
  0x50   :  { %170 = vadd.xlane.f32.xlu1 %v169_v49 }
  0xa8   :  { %v110_v50 = vpop.xlane.xlu0 %109 }
  0xa9   :  { %v111_v51 = vrot.slane %v110_v50, 4 }
  0xab   :  { %v112_v52 = vadd.f32 %v111_v51, %v110_v50 }
  0xad   :  { %v113_v53 = vrot.slane %v112_v52, 2 }
  0xaf   :  { %v114_v54 = vadd.f32 %v113_v53, %v112_v52 }
  0xb1   :  { %v115_v55 = vrot.slane %v114_v54, 1 }
  0xb3   :  { %v116_v56 = vadd.f32 %v115_v55, %v114_v54 }
  0xb5   :  { %199 = vpush %v116_v56 }
  0xd3   :  { %v120_v57 = vpop.xlane.xlu0 %119 }
  0xd4   :  { %v121_v58 = vrot.slane %v120_v57, 4 }
  0xd5   :  { %v130_v59 = vpop.xlane.xlu1 %129 }
  0xd6   :  { %v131_v60 = vrot.slane %v130_v59, 4  ;;  %v122_v61 = vadd.f32 %v121_v58, %v120_v57 }
  0xd8   :  { %v132_v62 = vadd.f32 %v131_v60, %v130_v59  ;;  %v123_v63 = vrot.slane %v122_v61, 2 }
  0xd9   :  { %v171_v7 = vpop.xlane.xlu1 %170 }
  0xda   :  { %v133_v0 = vrot.slane %v132_v62, 2  ;;  %v124_v1 = vadd.f32 %v123_v63, %v122_v61  ;;  %v172_v8 = vrot.slane %v171_v7, 4 }
  0xdc   :  { %v125_v2 = vrot.slane %v124_v1, 1  ;;  %v134_v3 = vadd.f32 %v133_v0, %v132_v62  ;;  %v173_v9 = vadd.f32 %v172_v8, %v171_v7 }
  0xde   :  { %v126_v4 = vadd.f32 %v125_v2, %v124_v1  ;;  %v135_v5 = vrot.slane %v134_v3, 1  ;;  %v174_v11 = vrot.slane %v173_v9, 2 }
  0xe0   :  { %201 = vpush %v126_v4  ;;  %v136_v6 = vadd.f32 %v135_v5, %v134_v3  ;;  %v175_v13 = vadd.f32 %v174_v11, %v173_v9 }
  0xe2   :  { %203 = vpush %v136_v6  ;;  %v176_v14 = vrot.slane %v175_v13, 1 }
  0xe4   :  { %v177_v16 = vadd.f32 %v176_v14, %v175_v13 }
  0xe6   :  { %s200_s2 = spop %199 }
  0xe7   :  { %p138_p10 = scmp.lt.f32.partialorder %s200_s2, 0.0  ;;  %s139_s3 = sceil.f32 %s200_s2 }
  0xe8   :  { %s140_s29 = sfloor.f32 %s200_s2 }
  0xe9   :  { %s341_s3 = smov (!%p138_p10, %s139_s3), %s140_s29 }
  0xea   :  { %s142_s30 = ssub.f32 2048.0, %s341_s3  ;;  %p147_p11 = scmp.eq.f32.partialorder %s341_s3, 0.0 }
  0xeb   :  { %p149_p12 = scmp.ne.f32.partialorder %s341_s3, 0.0 }
  0xec   :  { %s148_s5 = scalar_select %p147_p11, 1.0, %s341_s3  ;;  %v143_v10 = vstv %s142_s30 }
  0xed   :  { %226 = vrcp.f32 %v143_v10 }
  0xee   :  { %v150_v12 = vstv %s148_s5 }
  0xef   :  { %228 = vrcp.f32 %v150_v12 }
  0xfa   :  { %v227_v15 = vpop.eup %226 }
  0xfb   :  { %205 = vpush %v227_v15 }
  0xfc   :  { %v229_v17 = vpop.eup %228 }
  0xfd   :  { %207 = vpush %v229_v17 }
  0xfe   :  { %209 = vpush %v177_v16 }
 0x111   :  { %s202_s6 = spop %201 }
 0x113   :  { %s204_s7 = spop %203 }
 0x12c   :  { %s206_s8 = spop %205 }
 0x12d   :  { %s146_s9 = smul.f32 2048.0, %s206_s8 }
 0x12e   :  { %s208_s10 = spop %207 }
 0x12f   :  { %s153_s11 = smul.f32 2048.0, %s208_s10  ;;  %s210_s12 = spop %209 }
 0x130   :  { %s156_s13 = scalar_select %p149_p12, %s146_s9, 1.0 }
 0x131   :  { %s154_s14 = ssub.f32 %s153_s11, %s146_s9  ;;  %s179_s15 = smul.f32 -0.5, %s210_s12 }
 0x132   :  { %s158_s16 = smul.f32 %s202_s6, %s156_s13 }
 0x133   :  { %s343_s14 = smov (!%p149_p12, %s154_s14), 1.0  ;;  %s180_s19 = smul.f32 0.5, %s179_s15 }
 0x134   :  { %s157_s17 = smul.f32 %s204_s7, %s343_s14 }
 0x136   :  { %s159_s18 = sadd.f32 %s158_s16, %s157_s17 }
 0x138   :  { %s181_s20 = sadd.f32 %s180_s19, %s159_s18 }
 0x13a   :  { %183 = sst [smem:[#allocation10]] %s181_s20 }
 0x13b   :  { %191 = dma.smem_to_hbm %s288_s21, 16, %s339_s4, [#allocation7]  }
 0x13c   :  { %282 = dma.done.wait [#allocation7], 16  }
 0x13d   :  { %283 = vsyncadd [#allocation7], 4294967280 }
 0x13e   :  { %195 = sfence }
 0x13f   :  { %196 = vsyncpa [#allocation6], 1 }
 0x140   :  { %197 = vsyncpa [#allocation9], 1 }
 0x141   :  { %198 = vsyncpa [#allocation7], 1 }

</bundles_post_ra>
